<compile_context>
chip_gen: v7x
topology: tpu7x:2x2x1
jax: 0.10.0
libtpu: 0.0.40
codegen_flags: <defaults>
</compile_context>

<pallas_src>
import math

import numpy as np
import jax
import jax.numpy as jnp
from jax.experimental import pallas as pl
from jax.experimental.pallas import tpu as pltpu


# ---------------------------------------------------------------------------
# Kernels
# ---------------------------------------------------------------------------

def _packed_kernel(t_ref, f_ref, seg_ref, sel_ref, o_ref):
    """Lane-dense path for chan < 128.

    t_ref:   (TB, k)  f32  -- k consecutive timesteps packed per output row
    f_ref:   (1, L)   f32  -- per-lane frequency, L = k * chan (multiple of 128)
    seg_ref: (1, L)   i32  -- lane -> which of the k timesteps it belongs to
    sel_ref: (1, L)   i32  -- 1 where the lane is a cos column, 0 for sin
    o_ref:   (TB, L)  f32
    """
    tb, k = t_ref.shape
    L = o_ref.shape[1]

    t = t_ref[...]                                       # (TB, k)
    segb = jnp.broadcast_to(seg_ref[...], (tb, L))       # (TB, L) i32

    # Expand each packed timestep across its chan-wide lane segment (exact copy,
    # just broadcasts + selects on the VPU/XLU -- no arithmetic).
    t_exp = jnp.broadcast_to(t[:, 0:1], (tb, L))
    for j in range(1, k):                                # k is static & small
        t_exp = jnp.where(segb == j,
                          jnp.broadcast_to(t[:, j:j + 1], (tb, L)),
                          t_exp)

    angles = t_exp * f_ref[...]                          # exact f32 products
    is_cos = jnp.broadcast_to(sel_ref[...], (tb, L)) != 0
    # Single full-width (multiple of 128 lanes) unmasked store.
    o_ref[...] = jnp.where(is_cos, jnp.cos(angles), jnp.sin(angles))


def _general_kernel(t_ref, f_ref, o_ref):
    """General path (chan >= 128 or packing not applicable).

    t_ref: (TB, 1) f32, f_ref: (1, half) f32, o_ref: (TB, chan) f32
    """
    half = f_ref.shape[1]
    args = t_ref[...] * f_ref[...]                       # (TB, half) broadcast mul
    # Write the two halves directly -- no concat, no extra (TB, chan) temp.
    o_ref[:, :half] = jnp.sin(args)
    o_ref[:, half:] = jnp.cos(args)


# ---------------------------------------------------------------------------
# Wrapper
# ---------------------------------------------------------------------------

def _pick_tb(rows: int, row_bytes: int) -> int:
    """Rows per tile: <= ~4 MiB per output buffer (safe for v7x's 64 MiB VMEM
    with double buffering), multiple of 8, capped at 2048 rows."""
    cap = max(8, (4 * 1024 * 1024) // max(row_bytes, 1))
    cap = max(8, (cap // 8) * 8)
    cap = min(cap, 2048)
    if rows <= cap:
        return rows          # single/last block == full extent -> always legal
    return cap               # multiple of 8


def sine_cosine_position_embeddings(time: jax.Array, chan: int) -> jax.Array:
    """time: (B,) float array of denoising steps -> (B, chan) float32."""
    assert chan % 2 == 0 and chan >= 4, "chan must be even and >= 4"
    B = time.shape[0]
    half = chan // 2
    scale = math.log(10000.0) / (half - 1)

    # freqs computed once at trace time with XLA (bit-identical to reference).
    base = jnp.exp(jnp.arange(half, dtype=jnp.float32) * (-scale))  # (half,)
    t = time.astype(jnp.float32)

    k = 128 // chan if (chan < 128 and 128 % chan == 0) else 1

    if k > 1 and B % k == 0:
        # ------------------- lane-dense packed path -------------------------
        rows, L = B // k, k * chan                       # L is a multiple of 128
        t2d = t.reshape(rows, k)                         # pure reshape
        f_full = jnp.tile(jnp.concatenate([base, base]), k).reshape(1, L)
        col = np.arange(L)
        seg = jnp.asarray((col // chan).astype(np.int32)).reshape(1, L)
        sel = jnp.asarray(((col % chan) >= half).astype(np.int32)).reshape(1, L)

        TB = _pick_tb(rows, L * 4)
        grid = (pl.cdiv(rows, TB),)
        out = pl.pallas_call(
            _packed_kernel,
            out_shape=jax.ShapeDtypeStruct((rows, L), jnp.float32),
            grid=grid,
            in_specs=[
                pl.BlockSpec((TB, k), lambda i: (i, 0)),
                pl.BlockSpec((1, L), lambda i: (0, 0)),
                pl.BlockSpec((1, L), lambda i: (0, 0)),
                pl.BlockSpec((1, L), lambda i: (0, 0)),
            ],
            out_specs=pl.BlockSpec((TB, L), lambda i: (i, 0)),
            compiler_params=pltpu.CompilerParams(
                dimension_semantics=("parallel",)),
        )(t2d, f_full, seg, sel)
        # (rows, k*chan) row-major is the same buffer layout as (B, chan).
        return out.reshape(B, chan)

    # ----------------------- general gridded path ---------------------------
    t2d = t.reshape(B, 1)
    freqs = base.reshape(1, half)
    TB = _pick_tb(B, chan * 4)
    grid = (pl.cdiv(B, TB),)
    return pl.pallas_call(
        _general_kernel,
        out_shape=jax.ShapeDtypeStruct((B, chan), jnp.float32),
        grid=grid,
        in_specs=[
            pl.BlockSpec((TB, 1), lambda i: (i, 0)),
            pl.BlockSpec((1, half), lambda i: (0, 0)),
        ],
        out_specs=pl.BlockSpec((TB, chan), lambda i: (i, 0)),
        compiler_params=pltpu.CompilerParams(
            dimension_semantics=("parallel",)),
    )(t2d, freqs)


# ---------------------------------------------------------------------------
# Reference + test
# ---------------------------------------------------------------------------

def _reference(time: jax.Array, chan: int) -> jax.Array:
    half = chan // 2
    emb = math.log(10000.0) / (half - 1)
    freqs = jnp.exp(jnp.arange(half, dtype=jnp.float32) * -emb)
    args = time.astype(jnp.float32)[:, None] * freqs[None, :]
    return jnp.concatenate([jnp.sin(args), jnp.cos(args)], axis=-1)


if __name__ == "__main__":
    # Case 1: chan < 128 -> lane-dense packed path (k = 128 // chan = 4).
    B, chan = 8, 32
    time = jax.random.uniform(jax.random.PRNGKey(0), (B,),
                              minval=0.0, maxval=1000.0, dtype=jnp.float32)
    out = jax.block_until_ready(sine_cosine_position_embeddings(time, chan))
    ref = _reference(time, chan)
    assert out.shape == (B, chan), out.shape
    assert out.dtype == jnp.float32, out.dtype
    assert jnp.allclose(out, ref, atol=1e-5, rtol=1e-5), "packed path mismatch"

    # Case 2: chan >= 128 -> general gridded path (direct half stores).
    B2, chan2 = 16, 128
    time2 = jax.random.uniform(jax.random.PRNGKey(1), (B2,),
                               minval=0.0, maxval=1000.0, dtype=jnp.float32)
    out2 = jax.block_until_ready(sine_cosine_position_embeddings(time2, chan2))
    ref2 = _reference(time2, chan2)
    assert out2.shape == (B2, chan2), out2.shape
    assert out2.dtype == jnp.float32, out2.dtype
    assert jnp.allclose(out2, ref2, atol=1e-5, rtol=1e-5), "general path mismatch"

    print("KERNEL_OK")
</pallas_src>

<mosaic_0001>
module attributes {stable_mosaic.version = 11 : i64} {
  func.func @_packed_kernel(%arg0: i32, %arg1: memref<2x4xf32, #tpu.memory_space<vmem>>, %arg2: memref<1x128xf32, #tpu.memory_space<vmem>>, %arg3: memref<1x128xi32, #tpu.memory_space<vmem>>, %arg4: memref<1x128xi32, #tpu.memory_space<vmem>>, %arg5: memref<2x128xf32, #tpu.memory_space<vmem>>) attributes {dimension_semantics = [#tpu.dimension_semantics<parallel>], iteration_bounds = array<i64: 1>, scalar_prefetch = 0 : i64, scratch_operands = 0 : i64, tpu.core_type = #tpu.core_type<tc>, window_params = [{transform_indices = @transform_0, window_bounds = array<i64: 2, 4>}, {pipeline_mode = #tpu.pipeline_mode<synchronous>, transform_indices = @transform_1, window_bounds = array<i64: 1, 128>}, {pipeline_mode = #tpu.pipeline_mode<synchronous>, transform_indices = @transform_2, window_bounds = array<i64: 1, 128>}, {pipeline_mode = #tpu.pipeline_mode<synchronous>, transform_indices = @transform_3, window_bounds = array<i64: 1, 128>}, {transform_indices = @transform_4, window_bounds = array<i64: 2, 128>}]} {
    %c0 = arith.constant 0 : index
    %c0_0 = arith.constant 0 : index
    %0 = vector.load %arg1[%c0, %c0_0] : memref<2x4xf32, #tpu.memory_space<vmem>>, vector<2x4xf32>
    %c0_1 = arith.constant 0 : index
    %c0_2 = arith.constant 0 : index
    %1 = vector.load %arg3[%c0_1, %c0_2] : memref<1x128xi32, #tpu.memory_space<vmem>>, vector<1x128xi32>
    %2 = vector.shape_cast %1 : vector<1x128xi32> to vector<1x128xi32>
    %3 = vector.broadcast %2 : vector<1x128xi32> to vector<2x128xi32>
    %4 = vector.extract_strided_slice %0 {offsets = [0, 0], sizes = [2, 1], strides = [1, 1]} : vector<2x4xf32> to vector<2x1xf32>
    %5 = vector.shape_cast %4 : vector<2x1xf32> to vector<2x1xf32>
    %6 = vector.broadcast %5 : vector<2x1xf32> to vector<2x128xf32>
    %c1_i32 = arith.constant 1 : i32
    %7 = vector.broadcast %c1_i32 : i32 to vector<2x128xi32>
    %8 = arith.cmpi eq, %3, %7 : vector<2x128xi32>
    %9 = vector.extract_strided_slice %0 {offsets = [0, 1], sizes = [2, 1], strides = [1, 1]} : vector<2x4xf32> to vector<2x1xf32>
    %10 = vector.shape_cast %9 : vector<2x1xf32> to vector<2x1xf32>
    %11 = vector.broadcast %10 : vector<2x1xf32> to vector<2x128xf32>
    %12 = arith.select %8, %11, %6 : vector<2x128xi1>, vector<2x128xf32>
    %c2_i32 = arith.constant 2 : i32
    %13 = vector.broadcast %c2_i32 : i32 to vector<2x128xi32>
    %14 = arith.cmpi eq, %3, %13 : vector<2x128xi32>
    %15 = vector.extract_strided_slice %0 {offsets = [0, 2], sizes = [2, 1], strides = [1, 1]} : vector<2x4xf32> to vector<2x1xf32>
    %16 = vector.shape_cast %15 : vector<2x1xf32> to vector<2x1xf32>
    %17 = vector.broadcast %16 : vector<2x1xf32> to vector<2x128xf32>
    %18 = arith.select %14, %17, %12 : vector<2x128xi1>, vector<2x128xf32>
    %c3_i32 = arith.constant 3 : i32
    %19 = vector.broadcast %c3_i32 : i32 to vector<2x128xi32>
    %20 = arith.cmpi eq, %3, %19 : vector<2x128xi32>
    %21 = vector.extract_strided_slice %0 {offsets = [0, 3], sizes = [2, 1], strides = [1, 1]} : vector<2x4xf32> to vector<2x1xf32>
    %22 = vector.shape_cast %21 : vector<2x1xf32> to vector<2x1xf32>
    %23 = vector.broadcast %22 : vector<2x1xf32> to vector<2x128xf32>
    %24 = arith.select %20, %23, %18 : vector<2x128xi1>, vector<2x128xf32>
    %c0_3 = arith.constant 0 : index
    %c0_4 = arith.constant 0 : index
    %25 = vector.load %arg2[%c0_3, %c0_4] : memref<1x128xf32, #tpu.memory_space<vmem>>, vector<1x128xf32>
    %26 = vector.broadcast %25 : vector<1x128xf32> to vector<2x128xf32>
    %27 = arith.mulf %24, %26 : vector<2x128xf32>
    %c0_5 = arith.constant 0 : index
    %c0_6 = arith.constant 0 : index
    %28 = vector.load %arg4[%c0_5, %c0_6] : memref<1x128xi32, #tpu.memory_space<vmem>>, vector<1x128xi32>
    %29 = vector.shape_cast %28 : vector<1x128xi32> to vector<1x128xi32>
    %30 = vector.broadcast %29 : vector<1x128xi32> to vector<2x128xi32>
    %c0_i32 = arith.constant 0 : i32
    %31 = vector.broadcast %c0_i32 : i32 to vector<2x128xi32>
    %32 = arith.cmpi ne, %30, %31 : vector<2x128xi32>
    %33 = math.cos %27 : vector<2x128xf32>
    %34 = math.sin %27 : vector<2x128xf32>
    %35 = arith.select %32, %33, %34 : vector<2x128xi1>, vector<2x128xf32>
    %c0_7 = arith.constant 0 : index
    %c0_8 = arith.constant 0 : index
    %36 = vector.load %arg5[%c0_7, %c0_8] : memref<2x128xf32, #tpu.memory_space<vmem>>, vector<2x128xf32>
    tpu.vector_store %arg5[%c0_7, %c0_8], %35 {strides = array<i32>} : memref<2x128xf32, #tpu.memory_space<vmem>>, vector<2x128xf32>,
    return
  }
  func.func @transform_0(%arg0: i32) -> (i32, i32) {
    %c0_i32 = arith.constant 0 : i32
    %c0_i32_0 = arith.constant 0 : i32
    return %arg0, %c0_i32 : i32, i32
  }
  func.func @transform_1(%arg0: i32) -> (i32, i32) {
    %c0_i32 = arith.constant 0 : i32
    %c0_i32_0 = arith.constant 0 : i32
    %c0_i32_1 = arith.constant 0 : i32
    return %c0_i32, %c0_i32_0 : i32, i32
  }
  func.func @transform_2(%arg0: i32) -> (i32, i32) {
    %c0_i32 = arith.constant 0 : i32
    %c0_i32_0 = arith.constant 0 : i32
    %c0_i32_1 = arith.constant 0 : i32
    return %c0_i32, %c0_i32_0 : i32, i32
  }
  func.func @transform_3(%arg0: i32) -> (i32, i32) {
    %c0_i32 = arith.constant 0 : i32
    %c0_i32_0 = arith.constant 0 : i32
    %c0_i32_1 = arith.constant 0 : i32
    return %c0_i32, %c0_i32_0 : i32, i32
  }
  func.func @transform_4(%arg0: i32) -> (i32, i32) {
    %c0_i32 = arith.constant 0 : i32
    %c0_i32_0 = arith.constant 0 : i32
    return %arg0, %c0_i32 : i32, i32
  }
}

</mosaic_0001>

<bundles_post_ra>
// kernel: tpu_custom_call.1
= control target key start
LH: loop header
LB: loop body
LE: loop exit
PB: predicated region body
PF: predicated region fallthrough
CT: control target
= control target key end

     0   :  { %9 = vsyncpa [#allocation3], 0  ;;  %s473_s0 = inlined_call_operand.hbm [shape: f32[2,4], index: 0, kind: input, shape index: {}]   ;;  %s474_s1 = inlined_call_operand.vmem [shape: f32[1,128], index: 1, kind: input, shape index: {}]   ;;  %s475_s2 = inlined_call_operand.vmem [shape: s32[1,128], index: 2, kind: input, shape index: {}]   ;;  %s476_s3 = inlined_call_operand.vmem [shape: s32[1,128], index: 3, kind: input, shape index: {}]   ;;  %s477_s4 = inlined_call_operand.hbm [shape: f32[2,128], index: 4, kind: output, shape index: {}]  }
   0x1   :  { %10 = vsyncpa [#allocation4], 0  ;;  %s381_s15 = smov [#allocation2]   ;;  %s333_s19 = scalar_lea.hbm %s473_s0, 32 }
   0x2   :  { %s17_s16 = sshll.u32 %s381_s15, 4  ;;  %p334_p0 = scmp.ne.s32.totalorder %s473_s0, %s333_s19  ;;  %s18_s16 = int_to_ptr.vmem [resolvable:$true] %s17_s16 }
   0x3   :  { %p337_p1 = scmp.lt.u32.totalorder %s333_s19, %s473_s0 }
   0x5   :  { %p339_p2 = pnand %p337_p1, %p334_p0 }
   0x7   :  { %342 = shalt.err (!%p339_p2)
}
   0x8   :  { %s343_s24 = scalar_lea.vmem %s18_s16, 32  ;;  %p348_p4 = scmp.lt.s32.totalorder %s18_s16, %s18_s16 }
   0x9   :  { %p344_p3 = scmp.ne.s32.totalorder %s18_s16, %s343_s24  ;;  %p349_p5 = scmp.lt.s32.totalorder %s343_s24, %s343_s24 }
   0xb   :  { %p350_p6 = por %p349_p5, %p348_p4 }
   0xd   :  { %p351_p7 = pnand %p350_p6, %p344_p3 }
   0xf   :  { %354 = shalt.err (!%p351_p7)
}
  0x10   :  { %20 = dma.hbm_to_vmem [thread:$0]  %s473_s0, 32, %s18_s16, [#allocation3]  }
  0x11   :  { %377 = dma.done.wait [#allocation3], 32  }
  0x12   :  { %378 = vsyncadd [#allocation3], 4294967264  ;;  %v382_v0 = vmov 0   ;;  %v383_v1 = vmov 2   ;;  %v30_v2 = vld [vmem:[#allocation2] sm:$0x3] }
  0x13   :  { %324 = vset.pattern.permute.xlu0 %v382_v0  ;;  %326 = vset.pattern.permute.xlu1 %v383_v1  ;;  %v384_v3 = vmov 1   ;;  %v385_v4 = vmov 3   ;;  %v297_v7 = vld [vmem:[%s475_s2] ss:$0 sm:$0xff]  ;;  %v386_v25 = vmov 683565275  }
  0x14   :  { %38 = vperm.xlu0 %324, %v30_v2   ;;  %49 = vperm.xlu1 %326, %v30_v2   ;;  %vm41_vm0 = vcmp.eq.s32.totalorder %v297_v7, 1  ;;  %vm47_vm1 = vcmp.eq.s32.totalorder %v297_v7, 2  ;;  %vm53_vm2 = vcmp.eq.s32.totalorder %v297_v7, 3  ;;  %v298_v11 = vld [vmem:[%s474_s1] ss:$0 sm:$0xff]  ;;  %s392_s30 = smov [#allocation5]  }
  0x15   :  { %v387_v27 = vmov 2475754826   ;;  %v388_v30 = vmov 2131351028   ;;  %v389_v33 = vmov 2102212464  }
  0x16   :  { %v390_v36 = vmov 920167782   ;;  %v391_v39 = vmov 1326507024   ;;  %s288_s5 = sshll.u32 %s392_s30, 4  ;;  %s289_s5 = int_to_ptr.vmem [resolvable:$true] %s288_s5 }
  0x17   :  { %p360_p9 = scmp.lt.s32.totalorder %s289_s5, %s289_s5 }
  0x18   :  { %325 = vset.pattern.permute.xlu0 %v384_v3  ;;  %327 = vset.pattern.permute.xlu1 %v385_v4 }
  0x19   :  { %43 = vperm.xlu0 %325, %v30_v2   ;;  %55 = vperm.xlu1 %327, %v30_v2  }
  0x1d   :  { %328 = vset.pattern.permute.xlu0 %v385_v4 }
  0x93   :  { %v39_v5 = vpop.permute.xlu0 %38  ;;  %v50_v6 = vpop.permute.xlu1 %49 }
  0x98   :  { %v44_v8 = vpop.permute.xlu0 %43  ;;  %v56_v9 = vpop.permute.xlu1 %55 }
  0x99   :  { %v46_v10 = vsel %vm41_vm0, %v44_v8, %v39_v5 }
  0x9a   :  { %v52_v12 = vsel %vm47_vm1, %v50_v6, %v46_v10 }
  0x9b   :  { %v58_v13 = vsel %vm53_vm2, %v56_v9, %v52_v12 }
  0x9c   :  { %v436_v14 = vmul.f32 %v298_v11, %v58_v13 }
  0x9e   :  { %v76_v15 = vand.u32 2139095040, %v436_v14  ;;  %v73_v19 = vand.u32 2147483647, %v436_v14  ;;  %vm75_vm10 = vcmp.lt.s32.totalorder %v436_v14, 0 }
  0xa0   :  { %v77_v16 = vshrl.u32 %v76_v15, 23  ;;  %v80_v22 = vand.u32 8388607, %v73_v19  ;;  %vm74_vm11 = vcmp.le.f32.partialorder %v73_v19, 0.7853982 }
  0xa2   :  { %v300_v17 = vadd.s32 4294967169, %v77_v16  ;;  %v81_v41 = vor.u32 8388608, %v80_v22 }
  0xa4   :  { %v83_v18 = vadd.s32 1, %v300_v17  ;;  %v121_v55 = vshll.u32 %v81_v41, 8 }
  0xa6   :  { %vm84_vm3 = vcmp.gt.s32.totalorder %v83_v18, 0 }
  0xa7   :  { %v85_v20 = vsel %vm84_vm3, %v83_v18, 0  ;;  %vm165_vm3 = vweird.f32 %v436_v14 }
  0xa8   :  { %v87_v21 = vand.u32 31, %v85_v20  ;;  %v86_v24 = vshrl.u32 %v85_v20, 5 }
  0xaa   :  { %v88_v23 = vsub.s32 32, %v87_v21  ;;  %v90_v26 = vshll.u32 %v386_v25, %v87_v21  ;;  %v93_v28 = vshll.u32 %v387_v27, %v87_v21  ;;  %v96_v32 = vshll.u32 %v388_v30, %v87_v21 }
  0xab   :  { %v99_v35 = vshll.u32 %v389_v33, %v87_v21  ;;  %v102_v38 = vshll.u32 %v390_v36, %v87_v21  ;;  %vm105_vm4 = vcmp.lt.s32.totalorder %v86_v24, 1  ;;  %vm108_vm5 = vcmp.lt.s32.totalorder %v86_v24, 4 }
  0xac   :  { %v91_v29 = vshrl.u32 %v387_v27, %v88_v23  ;;  %v94_v31 = vshrl.u32 %v388_v30, %v88_v23  ;;  %v97_v34 = vshrl.u32 %v389_v33, %v88_v23  ;;  %v100_v37 = vshrl.u32 %v390_v36, %v88_v23 }
  0xad   :  { %v103_v40 = vshrl.u32 %v391_v39, %v88_v23  ;;  %v89_v50 = vshrl.u32 %v386_v25, %v88_v23  ;;  %vm107_vm6 = vcmp.lt.s32.totalorder %v86_v24, 3  ;;  %vm106_vm7 = vcmp.lt.s32.totalorder %v86_v24, 2 }
  0xae   :  { %v92_v42 = vor.u32 %v91_v29, %v90_v26  ;;  %v95_v43 = vor.u32 %v94_v31, %v93_v28  ;;  %v98_v44 = vor.u32 %v97_v34, %v96_v32  ;;  %v101_v45 = vor.u32 %v100_v37, %v99_v35  ;;  %v299_v37 = vld [vmem:[%s476_s3] ss:$0 sm:$0xff]  ;;  %s355_s3 = scalar_lea.vmem %s289_s5, 32 }
  0xaf   :  { %v104_v46 = vor.u32 %v103_v40, %v102_v38  ;;  %vm72_vm12 = vcmp.ne.s32.totalorder %v299_v37, 0  ;;  %p356_p8 = scmp.ne.s32.totalorder %s289_s5, %s355_s3  ;;  %p361_p10 = scmp.lt.s32.totalorder %s355_s3, %s355_s3 }
  0xb0   :  { %v110_v47 = vsel %vm108_vm5, %v98_v44, 2102212464  ;;  %v113_v48 = vsel %vm105_vm4, %v92_v42, %v95_v43  ;;  %v117_v49 = vsel %vm105_vm4, %v95_v43, %v98_v44  ;;  %v114_v51 = vsel %vm108_vm5, %v101_v45, 920167782 }
  0xb1   :  { %v118_v52 = vsel %vm108_vm5, %v104_v46, 1326507024  ;;  %v115_v53 = vsel %vm107_vm6, %v98_v44, %v114_v51  ;;  %v109_v56 = vsel %vm105_vm4, %v89_v50, %v92_v42  ;;  %v111_v57 = vsel %vm107_vm6, %v95_v43, %v110_v47  ;;  %p362_p11 = por %p361_p10, %p360_p9 }
  0xb2   :  { %v119_v54 = vsel %vm107_vm6, %v101_v45, %v118_v52  ;;  %v116_v58 = vsel %vm106_vm7, %v113_v48, %v115_v53  ;;  %v112_v0 = vsel %vm106_vm7, %v109_v56, %v111_v57 }
  0xb3   :  { %v120_v59 = vsel %vm106_vm7, %v117_v49, %v119_v54  ;;  %v445_v62 = vmul.u32.u64.low %v121_v55, %v116_v58  ;;  %v446_v63 = vmul.u32.u64.high %v121_v55, %v116_v58, %v445_v62  ;;  %v128_v2 = vmul.u32 %v121_v55, %v112_v0  ;;  %p363_p12 = pnand %p362_p11, %p356_p8 }
  0xb4   :  { %v442_v60 = vmul.u32.u64.low %v121_v55, %v120_v59  ;;  %v443_v61 = vmul.u32.u64.high %v121_v55, %v120_v59, %v442_v60 }
  0xb5   :  { %v131_v1 = vadd.s32 1, %v446_v63 }
  0xb6   :  { %vm130_vm8 = vc.u32 %v443_v61, %v445_v62  ;;  %v129_v15 = vadd.s32 %v445_v62, %v443_v61 }
  0xb7   :  { %v132_v3 = vsel %vm130_vm8, %v131_v1, %v446_v63 }
  0xb8   :  { %v133_v4 = vadd.s32 %v132_v3, %v128_v2 }
  0xba   :  { %v134_v5 = vadd.s32 536870912, %v133_v4 }
  0xbc   :  { %v135_v6 = vshrl.u32 %v134_v5, 30 }
  0xbe   :  { %v136_v7 = vshll.u32 %v135_v6, 30  ;;  %v159_v28 = vsub.s32 4, %v135_v6 }
  0xc0   :  { %v137_v8 = vsub.s32 %v133_v4, %v136_v7  ;;  %v160_v31 = vsel %vm75_vm10, %v159_v28, %v135_v6 }
  0xc1   :  { %v162_v33 = vsel %vm74_vm11, 0, %v160_v31 }
  0xc2   :  { %v139_v9 = vsub.s32 0, %v137_v8  ;;  %v269_v34 = vadd.s32 3, %v162_v33  ;;  %v166_v35 = vand.u32 3, %v162_v33 }
  0xc4   :  { %v301_v10 = vmin.u32 %v139_v9, %v137_v8  ;;  %v270_v36 = vand.u32 3, %v269_v34  ;;  %vm171_vm13 = vcmp.eq.s32.totalorder %v166_v35, 2  ;;  %vm168_vm15 = vcmp.eq.s32.totalorder %v166_v35, 0 }
  0xc5   :  { %vm167_vm1 = vcmp.lt.s32.totalorder %v166_v35, 2 }
  0xc6   :  { %v141_v11 = vclz %v301_v10  ;;  %vm275_vm14 = vcmp.eq.s32.totalorder %v270_v36, 2  ;;  %vm272_vm0 = vcmp.eq.s32.totalorder %v270_v36, 0  ;;  %vm271_vm2 = vcmp.lt.s32.totalorder %v270_v36, 2 }
  0xc8   :  { %v302_v12 = vadd.s32 4294967294, %v141_v11 }
  0xca   :  { %vm303_vm9 = vcmp.lt.s32.totalorder %v302_v12, 0 }
  0xcb   :  { %v144_v13 = vsel %vm303_vm9, 0, %v302_v12 }
  0xcc   :  { %v145_v16 = vsub.s32 32, %v144_v13  ;;  %v149_v17 = vsub.s32 4294967266, %v144_v13  ;;  %v146_v18 = vshll.u32 %v137_v8, %v144_v13 }
  0xce   :  { %v147_v20 = vshrl.u32 %v129_v15, %v145_v16  ;;  %v150_v21 = vadd.s32 127, %v149_v17 }
  0xd0   :  { %v148_v22 = vor.u32 %v147_v20, %v146_v18  ;;  %v151_v23 = vshll.u32 %v150_v21, 23 }
  0xd2   :  { %v152_v24 = vor.u32 4788187, %v151_v23  ;;  %v155_v26 = vcvt.s32.f32 %v148_v22 }
  0xd4   :  { %v153_v25 = vand.u32 2147483647, %v152_v24 }
  0xd6   :  { %v156_v27 = vmul.f32 %v155_v26, %v153_v25 }
  0xd8   :  { %v157_v29 = vxor.u32 2147483648, %v156_v27 }
  0xda   :  { %v158_v30 = vsel %vm75_vm10, %v157_v29, %v156_v27 }
  0xdb   :  { %v161_v32 = vsel %vm74_vm11, %v436_v14, %v158_v30 }
  0xdc   :  { %329 = vcosq.f32 %v161_v32 }
  0xdd   :  { %331 = vsinq.f32 %v161_v32 }
  0xe6   :  { %v330_v38 = vpop.eup %329 }
  0xe7   :  { %v332_v39 = vpop.eup %331  ;;  %v172_v40 = vxor.u32 2147483648, %v330_v38 }
  0xe8   :  { %v169_v41 = vxor.u32 2147483648, %v332_v39 }
  0xe9   :  { %v173_v19 = vsel %vm171_vm13, %v172_v40, %v332_v39  ;;  %v277_v42 = vsel %vm275_vm14, %v172_v40, %v332_v39 }
  0xea   :  { %v170_v43 = vsel %vm168_vm15, %v330_v38, %v169_v41  ;;  %v274_v44 = vsel %vm272_vm0, %v330_v38, %v169_v41 }
  0xeb   :  { %v174_v45 = vsel %vm167_vm1, %v170_v43, %v173_v19  ;;  %v278_v46 = vsel %vm271_vm2, %v274_v44, %v277_v42 }
  0xec   :  { %v175_v47 = vsel %vm165_vm3, nan, %v174_v45  ;;  %v279_v48 = vsel %vm165_vm3, nan, %v278_v46 }
  0xed   :  { %v280_v49 = vsel %vm72_vm12, %v175_v47, %v279_v48 }
  0xee   :  { %281 = vst [vmem:[#allocation5] sm:$0x3] %v280_v49 }
  0xef   :  { %366 = shalt.err (!%p363_p12)
}
  0xf0   :  { %s367_s8 = scalar_lea.hbm %s477_s4, 32 }
  0xf1   :  { %p368_p13 = scmp.ne.s32.totalorder %s477_s4, %s367_s8  ;;  %p371_p0 = scmp.lt.u32.totalorder %s367_s8, %s477_s4 }
  0xf3   :  { %p373_p1 = pnand %p371_p0, %p368_p13 }
  0xf5   :  { %376 = shalt.err (!%p373_p1)
}
  0xf6   :  { %291 = dma.vmem_to_hbm [thread:$0]  %s289_s5, 32, %s477_s4, [#allocation4]  }
  0xf7   :  { %379 = dma.done.wait [#allocation4], 32  }
  0xf8   :  { %380 = vsyncadd [#allocation4], 4294967264 }
  0xf9   :  { %295 = vsyncpa [#allocation3], 1 }
  0xfa   :  { %296 = vsyncpa [#allocation4], 1 }

</bundles_post_ra>
